<compile_context>
chip_gen: v7x
topology: tpu7x:2x2x1
jax: 0.10.0
libtpu: 0.0.40
codegen_flags: <defaults>
</compile_context>

<pallas_src>
import jax
import jax.numpy as jnp
from jax.experimental import pallas as pl
from jax.experimental.pallas import tpu as pltpu


def _reprogram_kernel(x_ref, p_ref, o_ref):
    # x_ref: (TR, F) row tile of the flattened image batch
    # p_ref: (1,  F) raw perturbation P (broadcast across rows)
    # o_ref: (TR, F) output tile
    x = x_ref[...].astype(jnp.float32)
    t = jnp.tanh(p_ref[...].astype(jnp.float32))   # EUP; overlaps with VPU work
    o_ref[...] = jnp.clip(x + t, -1.0, 1.0).astype(o_ref.dtype)


def _pick_row_tile(n_rows, feat, itemsize, target_bytes=4 << 20):
    """Pick a row tile: big enough to amortize per-step overhead, satisfying
    the (8,128) block constraint (tile % 8 == 0, or tile == full dim), and
    small enough (~4 MiB/block) to stay under VMEM limits with double
    buffering, even on v7x's 64 MiB VMEM."""
    rows = max(1, target_bytes // max(1, feat * itemsize))
    if rows >= n_rows:
        return n_rows
    rows = (rows // 8) * 8
    while rows >= 8:
        if n_rows % rows == 0:
            return rows
        rows -= 8
    return n_rows  # fallback: single block over the full batch


def program_forward(image, P):
    """Pallas implementation of Program.forward: clamp(image + tanh(P), -1, 1).

    image: (N, C, H, W); P: (C, H, W) broadcast across the batch.
    """
    N, C, H, W = image.shape
    assert P.shape == (C, H, W)
    F = C * H * W

    # Lane-dense layout: last dim F (= 1024 in the test config, multiple of 128).
    x2 = image.reshape(N, F)
    p2 = P.reshape(1, F).astype(image.dtype)

    tr = _pick_row_tile(N, F, x2.dtype.itemsize)
    grid = (N // tr,)

    out2 = pl.pallas_call(
        _reprogram_kernel,
        out_shape=jax.ShapeDtypeStruct((N, F), image.dtype),
        grid_spec=pltpu.PrefetchScalarGridSpec(
            num_scalar_prefetch=0,
            grid=grid,
            in_specs=[
                pl.BlockSpec((tr, F), lambda i: (i, 0)),
                pl.BlockSpec((1, F), lambda i: (0, 0)),
            ],
            out_specs=pl.BlockSpec((tr, F), lambda i: (i, 0)),
        ),
        compiler_params=pltpu.CompilerParams(
            dimension_semantics=("parallel",)
        ),
    )(x2, p2)

    return out2.reshape(N, C, H, W)


if __name__ == "__main__":
    # Small config consistent with the module: channels=4, h1=16, w1=16, batch=2.
    key = jax.random.PRNGKey(0)
    k_img, k_p = jax.random.split(key)

    N, C, H, W = 2, 4, 16, 16
    image = jax.random.uniform(k_img, (N, C, H, W), dtype=jnp.float32,
                               minval=-1.0, maxval=1.0)
    # The PyTorch module initializes P to zeros; use small random values here
    # so the tanh/clamp path is actually exercised (deterministic via PRNGKey).
    P = 0.5 * jax.random.normal(k_p, (C, H, W), dtype=jnp.float32)

    out = program_forward(image, P)
    out = jax.block_until_ready(out)

    # Reference check in plain JAX.
    ref = jnp.clip(image + jnp.tanh(P)[None], -1.0, 1.0)
    assert out.shape == (N, C, H, W)
    assert jnp.allclose(out, ref, atol=1e-6), "mismatch vs reference"

    print("KERNEL_OK")
</pallas_src>

<mosaic_0001>
module attributes {stable_mosaic.version = 11 : i64} {
  func.func @_reprogram_kernel(%arg0: i32, %arg1: memref<2x1024xf32, #tpu.memory_space<vmem>>, %arg2: memref<1x1024xf32, #tpu.memory_space<vmem>>, %arg3: memref<2x1024xf32, #tpu.memory_space<vmem>>) attributes {dimension_semantics = [#tpu.dimension_semantics<parallel>], iteration_bounds = array<i64: 1>, scalar_prefetch = 0 : i64, scratch_operands = 0 : i64, tpu.core_type = #tpu.core_type<tc>, window_params = [{transform_indices = @transform_0, window_bounds = array<i64: 2, 1024>}, {pipeline_mode = #tpu.pipeline_mode<synchronous>, transform_indices = @transform_1, window_bounds = array<i64: 1, 1024>}, {transform_indices = @transform_2, window_bounds = array<i64: 2, 1024>}]} {
    %c0 = arith.constant 0 : index
    %c0_0 = arith.constant 0 : index
    %0 = vector.load %arg1[%c0, %c0_0] : memref<2x1024xf32, #tpu.memory_space<vmem>>, vector<2x1024xf32>
    %c0_1 = arith.constant 0 : index
    %c0_2 = arith.constant 0 : index
    %1 = vector.load %arg2[%c0_1, %c0_2] : memref<1x1024xf32, #tpu.memory_space<vmem>>, vector<1x1024xf32>
    %2 = math.tanh %1 : vector<1x1024xf32>
    %3 = vector.broadcast %2 : vector<1x1024xf32> to vector<2x1024xf32>
    %4 = arith.addf %0, %3 : vector<2x1024xf32>
    %cst = arith.constant -1.000000e+00 : f32
    %cst_3 = arith.constant 1.000000e+00 : f32
    %5 = vector.broadcast %cst : f32 to vector<2x1024xf32>
    %6 = arith.maximumf %5, %4 : vector<2x1024xf32>
    %7 = vector.broadcast %cst_3 : f32 to vector<2x1024xf32>
    %8 = arith.minimumf %7, %6 : vector<2x1024xf32>
    %c0_4 = arith.constant 0 : index
    %c0_5 = arith.constant 0 : index
    %9 = vector.load %arg3[%c0_4, %c0_5] : memref<2x1024xf32, #tpu.memory_space<vmem>>, vector<2x1024xf32>
    tpu.vector_store %arg3[%c0_4, %c0_5], %8 {strides = array<i32>} : memref<2x1024xf32, #tpu.memory_space<vmem>>, vector<2x1024xf32>,
    return
  }
  func.func @transform_0(%arg0: i32) -> (i32, i32) {
    %c0_i32 = arith.constant 0 : i32
    %c0_i32_0 = arith.constant 0 : i32
    return %arg0, %c0_i32 : i32, i32
  }
  func.func @transform_1(%arg0: i32) -> (i32, i32) {
    %c0_i32 = arith.constant 0 : i32
    %c0_i32_0 = arith.constant 0 : i32
    %c0_i32_1 = arith.constant 0 : i32
    return %c0_i32, %c0_i32_0 : i32, i32
  }
  func.func @transform_2(%arg0: i32) -> (i32, i32) {
    %c0_i32 = arith.constant 0 : i32
    %c0_i32_0 = arith.constant 0 : i32
    return %arg0, %c0_i32 : i32, i32
  }
}

</mosaic_0001>

<bundles_post_ra>
// kernel: tpu_custom_call.1
= control target key start
LH: loop header
LB: loop body
LE: loop exit
PB: predicated region body
PF: predicated region fallthrough
CT: control target
= control target key end

     0   :  { %7 = vsyncpa [#allocation3], 0  ;;  %s268_s0 = inlined_call_operand.hbm [shape: f32[2,1024], index: 0, kind: input, shape index: {}]   ;;  %s269_s1 = inlined_call_operand.hbm [shape: f32[1,1024], index: 1, kind: input, shape index: {}]   ;;  %s270_s2 = inlined_call_operand.hbm [shape: f32[2,1024], index: 2, kind: output, shape index: {}]  }
   0x1   :  { %8 = vsyncpa [#allocation6], 0 }
   0x2   :  { %9 = vsyncpa [#allocation4], 0  ;;  %s213_s9 = smov [#allocation2]   ;;  %s214_s11 = smov [#allocation5]  }
   0x3   :  { %s16_s10 = sshll.u32 %s213_s9, 4  ;;  %s26_s12 = sshll.u32 %s214_s11, 4  ;;  %s17_s10 = int_to_ptr.vmem [resolvable:$true] %s16_s10  ;;  %s27_s12 = int_to_ptr.vmem [resolvable:$true] %s26_s12 }
   0x4   :  { %s141_s15 = scalar_lea.hbm %s268_s0, 256 }
   0x5   :  { %p142_p0 = scmp.ne.s32.totalorder %s268_s0, %s141_s15  ;;  %p145_p1 = scmp.lt.u32.totalorder %s141_s15, %s268_s0 }
   0x7   :  { %p147_p2 = pnand %p145_p1, %p142_p0 }
   0x9   :  { %150 = shalt.err (!%p147_p2)
}
   0xa   :  { %s151_s20 = scalar_lea.vmem %s17_s10, 256  ;;  %p156_p4 = scmp.lt.s32.totalorder %s17_s10, %s17_s10 }
   0xb   :  { %p152_p3 = scmp.ne.s32.totalorder %s17_s10, %s151_s20  ;;  %p157_p5 = scmp.lt.s32.totalorder %s151_s20, %s151_s20 }
   0xd   :  { %p158_p6 = por %p157_p5, %p156_p4 }
   0xf   :  { %p159_p7 = pnand %p158_p6, %p152_p3 }
  0x11   :  { %162 = shalt.err (!%p159_p7)
}
  0x12   :  { %19 = dma.hbm_to_vmem [thread:$0]  %s268_s0, 256, %s17_s10, [#allocation3]  }
  0x13   :  { %s163_s25 = scalar_lea.hbm %s269_s1, 128 }
  0x14   :  { %p164_p8 = scmp.ne.s32.totalorder %s269_s1, %s163_s25  ;;  %p167_p9 = scmp.lt.u32.totalorder %s163_s25, %s269_s1 }
  0x16   :  { %p169_p10 = pnand %p167_p9, %p164_p8 }
  0x18   :  { %172 = shalt.err (!%p169_p10)
}
  0x19   :  { %s173_s30 = scalar_lea.vmem %s27_s12, 128  ;;  %p178_p12 = scmp.lt.s32.totalorder %s27_s12, %s27_s12 }
  0x1a   :  { %p174_p11 = scmp.ne.s32.totalorder %s27_s12, %s173_s30  ;;  %p179_p13 = scmp.lt.s32.totalorder %s173_s30, %s173_s30 }
  0x1c   :  { %p180_p0 = por %p179_p13, %p178_p12 }
  0x1e   :  { %p181_p1 = pnand %p180_p0, %p174_p11 }
  0x20   :  { %184 = shalt.err (!%p181_p1)
}
  0x21   :  { %29 = dma.hbm_to_vmem [thread:$0]  %s269_s1, 128, %s27_s12, [#allocation6]  }
  0x22   :  { %207 = dma.done.wait [#allocation3], 256  }
  0x23   :  { %208 = vsyncadd [#allocation3], 4294967040 }
  0x24   :  { %209 = dma.done.wait [#allocation6], 128  }
  0x25   :  { %210 = vsyncadd [#allocation6], 4294967168  ;;  %v38_v0 = vld [vmem:[#allocation5] sm:$0xff]  ;;  %v41_v1 = vlaneseq  ;;  %v215_v2 = vmov 1983009808   ;;  %v36_v30 = vld [vmem:[#allocation2] sm:$0xff] }
  0x26   :  { %139 = vtanh.f32 %v38_v0  ;;  %v76_v3 = vunpack.c.l.s4 %v215_v2  ;;  %v37_v34 = vld [vmem:[#allocation2 + $0x8] sm:$0xff]  ;;  %s216_s1 = smov [#allocation7]  }
  0x27   :  { %v42_v4 = vshrl.u32 %v41_v1, 7  ;;  %s123_s4 = sshll.u32 %s216_s1, 4  ;;  %s124_s4 = int_to_ptr.vmem [resolvable:$true] %s123_s4 }
  0x28   :  { %v77_v5 = vunpack.c.0.s8 %v76_v3  ;;  %s185_s5 = scalar_lea.vmem %s124_s4, 256  ;;  %p190_p3 = scmp.lt.s32.totalorder %s124_s4, %s124_s4 }
  0x29   :  { %v43_v6 = vsub.s32 0, %v42_v4  ;;  %v47_v7 = vsub.s32 1, %v42_v4  ;;  %v51_v8 = vsub.s32 2, %v42_v4  ;;  %v55_v9 = vsub.s32 3, %v42_v4  ;;  %p186_p2 = scmp.ne.s32.totalorder %s124_s4, %s185_s5  ;;  %p191_p4 = scmp.lt.s32.totalorder %s185_s5, %s185_s5 }
  0x2a   :  { %v59_v10 = vsub.s32 4, %v42_v4  ;;  %v63_v11 = vsub.s32 5, %v42_v4  ;;  %v67_v12 = vsub.s32 6, %v42_v4  ;;  %v71_v13 = vsub.s32 7, %v42_v4 }
  0x2b   :  { %v80_v15 = vsub.s32 %v77_v5, %v42_v4  ;;  %p192_p5 = por %p191_p4, %p190_p3 }
  0x2d   :  { %p193_p6 = pnand %p192_p5, %p186_p2 }
  0x30   :  { %v140_v14 = vpop.eup %139 }
  0x31   :  { %v44_v16 = vrot.slane %v140_v14, %v43_v6  ;;  %v48_v17 = vrot.slane %v140_v14, %v47_v7  ;;  %v52_v18 = vrot.slane %v140_v14, %v51_v8  ;;  %v56_v19 = vrot.slane %v140_v14, %v55_v9 }
  0x32   :  { %v60_v20 = vrot.slane %v140_v14, %v59_v10  ;;  %v64_v21 = vrot.slane %v140_v14, %v63_v11  ;;  %v68_v22 = vrot.slane %v140_v14, %v67_v12  ;;  %v72_v23 = vrot.slane %v140_v14, %v71_v13 }
  0x33   :  { %v73_v24 = vcombine.low %v44_v16, %v48_v17  ;;  %v74_v25 = vcombine.low %v52_v18, %v56_v19 }
  0x34   :  { %v90_v26 = vcombine.low %v60_v20, %v64_v21  ;;  %v91_v27 = vcombine.low %v68_v22, %v72_v23 }
  0x35   :  { %v81_v28 = vrot.slane %v73_v24, %v80_v15  ;;  %v88_v29 = vrot.slane %v74_v25, %v80_v15 }
  0x36   :  { %v98_v31 = vrot.slane %v90_v26, %v80_v15  ;;  %v105_v32 = vrot.slane %v91_v27, %v80_v15 }
  0x37   :  { %v89_v33 = vcombine.low %v81_v28, %v88_v29 }
  0x38   :  { %v106_v35 = vcombine.low %v98_v31, %v105_v32 }
  0x39   :  { %v109_v36 = vadd.f32 %v89_v33, %v36_v30 }
  0x3a   :  { %v110_v37 = vadd.f32 %v106_v35, %v37_v34 }
  0x3b   :  { %v133_v38 = vclamps-f32 %v109_v36, 1.0 }
  0x3c   :  { %v134_v39 = vclamps-f32 %v110_v37, 1.0 }
  0x3d   :  { %115 = vst [vmem:[#allocation7] sm:$0xff] %v133_v38 }
  0x3e   :  { %116 = vst [vmem:[#allocation7 + $0x8] sm:$0xff] %v134_v39 }
  0x3f   :  { %196 = shalt.err (!%p193_p6)
}
  0x40   :  { %s197_s8 = scalar_lea.hbm %s270_s2, 256 }
  0x41   :  { %p198_p7 = scmp.ne.s32.totalorder %s270_s2, %s197_s8  ;;  %p201_p8 = scmp.lt.u32.totalorder %s197_s8, %s270_s2 }
  0x43   :  { %p203_p9 = pnand %p201_p8, %p198_p7 }
  0x45   :  { %206 = shalt.err (!%p203_p9)
}
  0x46   :  { %126 = dma.vmem_to_hbm [thread:$0]  %s124_s4, 256, %s270_s2, [#allocation4]  }
  0x47   :  { %211 = dma.done.wait [#allocation4], 256  }
  0x48   :  { %212 = vsyncadd [#allocation4], 4294967040 }
  0x49   :  { %130 = vsyncpa [#allocation3], 1 }
  0x4a   :  { %131 = vsyncpa [#allocation6], 1 }
  0x4b   :  { %132 = vsyncpa [#allocation4], 1 }

</bundles_post_ra>
